<compile_context>
chip_gen: v7x
topology: tpu7x:2x2x1
jax: 0.10.0
libtpu: 0.0.40
codegen_flags: <defaults>
</compile_context>

<pallas_src>
import functools
import math

import jax
import jax.numpy as jnp
from jax.experimental import pallas as pl
from jax.experimental.pallas import tpu as pltpu


def _out_size(in_size: int, scale: float) -> int:
    # PyTorch: output_size = floor(input_size * scale_factor) (double precision).
    return int(math.floor(float(in_size) * float(scale)))


def _interp_matrix(in_size: int, scale: float) -> jnp.ndarray:
    """Dense 1-D linear-interpolation matrix (in_size, out_size).

    Matches PyTorch align_corners=False (antialias=False) semantics:
      src = max(0, (o + 0.5) / scale - 0.5); i0 = floor(src); i1 = min(i0+1, I-1)
    """
    out_size = _out_size(in_size, scale)
    o = jnp.arange(out_size, dtype=jnp.float32)
    src = (o + 0.5) / jnp.float32(scale) - 0.5
    src = jnp.maximum(src, 0.0)
    i0 = jnp.floor(src).astype(jnp.int32)
    i0 = jnp.minimum(i0, in_size - 1)
    i1 = jnp.minimum(i0 + 1, in_size - 1)
    w1 = src - i0.astype(jnp.float32)
    w0 = 1.0 - w1
    rows = jnp.arange(in_size, dtype=jnp.int32)[:, None]
    m = (rows == i0[None, :]).astype(jnp.float32) * w0[None, :] + \
        (rows == i1[None, :]).astype(jnp.float32) * w1[None, :]
    return m  # (in_size, out_size)


def _pick_block_batch(nc, in_slab_bytes, out_slab_bytes, interm_slab_bytes,
                      fixed_bytes, budget_bytes=10 * 1024 * 1024):
    """Largest divisor B of nc such that the block working set (double-buffered
    in/out + f32 intermediate + shared matrices) fits the VMEM budget, while
    keeping >=2 grid steps when possible (megacore sharding)."""
    per_slab = 2 * (in_slab_bytes + out_slab_bytes) + interm_slab_bytes
    avail = max(budget_bytes - fixed_bytes, per_slab)
    b_cap = max(1, avail // per_slab)
    if nc >= 2:
        b_cap = min(b_cap, max(1, (nc + 1) // 2))
    b = 1
    for cand in range(1, int(b_cap) + 1):
        if nc % cand == 0:
            b = cand
    return b


def _trilinear_kernel(x_ref, mwh_ref, mdt_ref, o_ref):
    # x_ref:  (B, D, H*W)      input slab batch
    # mwh_ref:(H*W, Ho*Wo)     fused H/W interpolation matrix (kron(mh, mw))
    # mdt_ref:(Do, D)          pre-transposed D interpolation matrix
    # o_ref:  (B, Do, Ho*Wo)   lane-dense output block
    B, D, HW = x_ref.shape
    _, Do, HoWo = o_ref.shape

    x = x_ref[...].astype(jnp.float32).reshape(B * D, HW)
    # Fused H/W interpolation: one 2-D MXU matmul, lane-dense N = Ho*Wo.
    t = jnp.dot(x, mwh_ref[...], preferred_element_type=jnp.float32)   # (B*D, HoWo)
    t = t.reshape(B, D, HoWo)

    # D interpolation as a batched matmul; result lands directly as (B, Do, HoWo),
    # no transpose of the large intermediate.
    mdt = jnp.broadcast_to(mdt_ref[...][None, :, :], (B, Do, D))
    out = jnp.einsum('bzd,bdx->bzx', mdt, t,
                     preferred_element_type=jnp.float32)               # (B, Do, HoWo)
    o_ref[...] = out.astype(o_ref.dtype)


@functools.partial(jax.jit, static_argnames=("scale",))
def trilinear(x: jnp.ndarray, scale: float) -> jnp.ndarray:
    """x: (N, C, D, H, W) -> (N, C, floor(D*s), floor(H*s), floor(W*s))."""
    N, C, D, H, W = x.shape
    Do, Ho, Wo = _out_size(D, scale), _out_size(H, scale), _out_size(W, scale)
    NC = N * C
    HW, HoWo = H * W, Ho * Wo

    # Interpolation matrices (wrapper-side "parameters").
    md = _interp_matrix(D, scale)            # (D, Do)
    mh = _interp_matrix(H, scale)            # (H, Ho)
    mw = _interp_matrix(W, scale)            # (W, Wo)
    mwh = jnp.kron(mh, mw)                   # (H*W, Ho*Wo): [(h*W+w), (ho*Wo+wo)]
    mdt = md.T                               # (Do, D)

    itemsize = jnp.dtype(x.dtype).itemsize
    B = _pick_block_batch(
        NC,
        in_slab_bytes=D * HW * itemsize,
        out_slab_bytes=Do * HoWo * itemsize,
        interm_slab_bytes=D * HoWo * 4,
        fixed_bytes=(HW * HoWo + Do * D) * 4,
    )
    grid = (NC // B,)

    x_flat = x.reshape(NC, D, HW)

    flops = 2 * NC * (D * HW * HoWo + Do * D * HoWo)
    bytes_accessed = (itemsize * NC * (D * HW + Do * HoWo)
                      + 4 * (HW * HoWo + Do * D))

    out_flat = pl.pallas_call(
        _trilinear_kernel,
        out_shape=jax.ShapeDtypeStruct((NC, Do, HoWo), x.dtype),
        grid_spec=pltpu.PrefetchScalarGridSpec(
            num_scalar_prefetch=0,
            grid=grid,
            in_specs=[
                pl.BlockSpec((B, D, HW), lambda i: (i, 0, 0)),
                pl.BlockSpec((HW, HoWo), lambda i: (0, 0)),
                pl.BlockSpec((Do, D), lambda i: (0, 0)),
            ],
            out_specs=pl.BlockSpec((B, Do, HoWo), lambda i: (i, 0, 0)),
        ),
        compiler_params=pltpu.CompilerParams(
            dimension_semantics=("parallel",),
            vmem_limit_bytes=32 * 1024 * 1024),
        cost_estimate=pl.CostEstimate(
            flops=flops, transcendentals=0, bytes_accessed=bytes_accessed),
    )(x_flat, mwh, mdt)

    return out_flat.reshape(N, C, Do, Ho, Wo)


def _trilinear_reference(x: jnp.ndarray, scale: float) -> jnp.ndarray:
    """Pure-JAX gather-based reference (PyTorch align_corners=False semantics)."""

    def axis_idx_w(in_size):
        out_size = _out_size(in_size, scale)
        o = jnp.arange(out_size, dtype=jnp.float32)
        src = jnp.maximum((o + 0.5) / jnp.float32(scale) - 0.5, 0.0)
        i0 = jnp.minimum(jnp.floor(src).astype(jnp.int32), in_size - 1)
        i1 = jnp.minimum(i0 + 1, in_size - 1)
        w1 = src - i0.astype(jnp.float32)
        return i0, i1, w1

    _, _, D, H, W = x.shape
    d0, d1, wd = axis_idx_w(D)
    h0, h1, wh = axis_idx_w(H)
    w0i, w1i, ww = axis_idx_w(W)

    def lerp_axis(a, axis, i0, i1, w1):
        lo = jnp.take(a, i0, axis=axis)
        hi = jnp.take(a, i1, axis=axis)
        shape = [1] * a.ndim
        shape[axis] = w1.shape[0]
        w = w1.reshape(shape)
        return lo * (1.0 - w) + hi * w

    y = lerp_axis(x, 4, w0i, w1i, ww)
    y = lerp_axis(y, 3, h0, h1, wh)
    y = lerp_axis(y, 2, d0, d1, wd)
    return y


if __name__ == "__main__":
    key = jax.random.PRNGKey(0)
    N, C, D, H, W = 2, 4, 8, 8, 8
    scale = 2.0
    x = jax.random.normal(key, (N, C, D, H, W), dtype=jnp.float32)

    out = trilinear(x, scale)
    out = jax.block_until_ready(out)

    ref = _trilinear_reference(x, scale)
    assert out.shape == (N, C, _out_size(D, scale), _out_size(H, scale),
                         _out_size(W, scale))
    assert jnp.allclose(out, ref, atol=1e-5, rtol=1e-5)

    print("KERNEL_OK")
</pallas_src>

<mosaic_0001>
module attributes {stable_mosaic.version = 11 : i64} {
  func.func @_trilinear_kernel(%arg0: i32, %arg1: memref<4x8x64xf32, #tpu.memory_space<vmem>>, %arg2: memref<64x256xf32, #tpu.memory_space<vmem>>, %arg3: memref<16x8xf32, #tpu.memory_space<vmem>>, %arg4: memref<4x16x256xf32, #tpu.memory_space<vmem>>) attributes {dimension_semantics = [#tpu.dimension_semantics<parallel>], iteration_bounds = array<i64: 2>, scalar_prefetch = 0 : i64, scratch_operands = 0 : i64, tpu.core_type = #tpu.core_type<tc>, window_params = [{transform_indices = @transform_0, window_bounds = array<i64: 4, 8, 64>}, {pipeline_mode = #tpu.pipeline_mode<synchronous>, transform_indices = @transform_1, window_bounds = array<i64: 64, 256>}, {pipeline_mode = #tpu.pipeline_mode<synchronous>, transform_indices = @transform_2, window_bounds = array<i64: 16, 8>}, {transform_indices = @transform_3, window_bounds = array<i64: 4, 16, 256>}]} {
    %c0 = arith.constant 0 : index
    %c0_0 = arith.constant 0 : index
    %c0_1 = arith.constant 0 : index
    %0 = vector.load %arg1[%c0, %c0_0, %c0_1] : memref<4x8x64xf32, #tpu.memory_space<vmem>>, vector<4x8x64xf32>
    %1 = vector.shape_cast %0 : vector<4x8x64xf32> to vector<32x64xf32>
    %c0_2 = arith.constant 0 : index
    %c0_3 = arith.constant 0 : index
    %2 = vector.load %arg2[%c0_2, %c0_3] : memref<64x256xf32, #tpu.memory_space<vmem>>, vector<64x256xf32>
    %cst = arith.constant dense<0.000000e+00> : vector<32x256xf32>
    %3 = tpu.matmul %1, %2, %cst {dimension_numbers = #tpu.dot_dimension_numbers<[1], [0], [0], [1], [0, 0, 1, 1], [], []>} : vector<32x64xf32>, vector<64x256xf32>, vector<32x256xf32> -> vector<32x256xf32>
    %4 = vector.shape_cast %3 : vector<32x256xf32> to vector<4x8x256xf32>
    %c0_4 = arith.constant 0 : index
    %c0_5 = arith.constant 0 : index
    %5 = vector.load %arg3[%c0_4, %c0_5] : memref<16x8xf32, #tpu.memory_space<vmem>>, vector<16x8xf32>
    %6 = vector.shape_cast %5 : vector<16x8xf32> to vector<1x16x8xf32>
    %7 = vector.shape_cast %6 : vector<1x16x8xf32> to vector<1x16x8xf32>
    %8 = vector.broadcast %7 : vector<1x16x8xf32> to vector<4x16x8xf32>
    "tpu.trace_start"() <{level = 10 : i32, message = "bzd,bdx->bzx"}> : () -> ()
    %cst_6 = arith.constant dense<0.000000e+00> : vector<4x16x256xf32>
    %9 = tpu.matmul %8, %4, %cst_6 {dimension_numbers = #tpu.dot_dimension_numbers<[2], [1], [1], [2], [0, 0, 0, 1, 1, 2], [0], [0]>} : vector<4x16x8xf32>, vector<4x8x256xf32>, vector<4x16x256xf32> -> vector<4x16x256xf32>
    "tpu.trace_stop"() : () -> ()
    %c0_7 = arith.constant 0 : index
    %c0_8 = arith.constant 0 : index
    %c0_9 = arith.constant 0 : index
    %10 = vector.load %arg4[%c0_7, %c0_8, %c0_9] : memref<4x16x256xf32, #tpu.memory_space<vmem>>, vector<4x16x256xf32>
    tpu.vector_store %arg4[%c0_7, %c0_8, %c0_9], %9 {strides = array<i32>} : memref<4x16x256xf32, #tpu.memory_space<vmem>>, vector<4x16x256xf32>,
    return
  }
  func.func @transform_0(%arg0: i32) -> (i32, i32, i32) {
    %c0_i32 = arith.constant 0 : i32
    %c0_i32_0 = arith.constant 0 : i32
    %c0_i32_1 = arith.constant 0 : i32
    return %arg0, %c0_i32, %c0_i32_0 : i32, i32, i32
  }
  func.func @transform_1(%arg0: i32) -> (i32, i32) {
    %c0_i32 = arith.constant 0 : i32
    %c0_i32_0 = arith.constant 0 : i32
    %c0_i32_1 = arith.constant 0 : i32
    return %c0_i32, %c0_i32_0 : i32, i32
  }
  func.func @transform_2(%arg0: i32) -> (i32, i32) {
    %c0_i32 = arith.constant 0 : i32
    %c0_i32_0 = arith.constant 0 : i32
    %c0_i32_1 = arith.constant 0 : i32
    return %c0_i32, %c0_i32_0 : i32, i32
  }
  func.func @transform_3(%arg0: i32) -> (i32, i32, i32) {
    %c0_i32 = arith.constant 0 : i32
    %c0_i32_0 = arith.constant 0 : i32
    %c0_i32_1 = arith.constant 0 : i32
    return %arg0, %c0_i32, %c0_i32_0 : i32, i32, i32
  }
}

</mosaic_0001>

<bundles_post_ra>
// kernel: trilinear.1
= control target key start
LH: loop header
LB: loop body
LE: loop exit
PB: predicated region body
PF: predicated region fallthrough
CT: control target
= control target key end

     0   :  { %s768_s12 = smov 0   ;;  %s881_s0 = inlined_call_operand.vmem [shape: f32[8,8,64], index: 0, kind: input, shape index: {}]   ;;  %s882_s1 = inlined_call_operand.vmem [shape: f32[64,256], index: 1, kind: input, shape index: {}]   ;;  %s883_s2 = inlined_call_operand.vmem [shape: f32[16,8], index: 2, kind: input, shape index: {}]   ;;  %s884_s3 = inlined_call_operand.vmem [shape: f32[8,16,256], index: 3, kind: output, shape index: {}]  }
   0x1 LB: > { %s689_s13 = sadd.s32 4294967295, %s745_s12   ;;  %p693_p0 = scmp.ge.s32.totalorder %s745_s12, 1  ;;  %s745_s12 = sphi %s768_s12, %s13_s12  }
   0x2   : > { %p138_p1 = scmp.lt.s32.totalorder %s745_s12, 3 }
   0x4   : > { %p139_p2 = pnand %p693_p0, %p138_p1 }
   0x5   : > { %v181_v0 = vld [vmem:[%s882_s1 + $0x8] sm:$0xff] (!%p139_p2)  ;;  %v183_v1 = vld [vmem:[%s882_s1 + $0x18] sm:$0xff] (!%p139_p2)  ;;  %v180_v2 = vld [vmem:[%s882_s1] sm:$0xff] (!%p139_p2)  ;;  %s694_s20 = sshll.u32 (!%p139_p2), %s689_s13, 2  ;;  %v747_v7 = vmov (!%p139_p2), 0.0   ;;  %vm196_vm0 = vcmask (!%p139_p2), 523264  }
   0x6   : > { %142 = sbr.rel (%p139_p2) target bundleno = 481 (0x1e1), region = 32  ;;  %v714_v3 = vpack.c.bf16 (!%p139_p2), %v183_v1, %v181_v0  ;;  %v182_v4 = vld [vmem:[%s882_s1 + $0x10] sm:$0xff] (!%p139_p2)  ;;  %v185_v5 = vld [vmem:[%s882_s1 + $0x28] sm:$0xff] (!%p139_p2)  ;;  %v187_v6 = vld [vmem:[%s882_s1 + $0x38] sm:$0xff] (!%p139_p2)  ;;  %273 = vmatprep.mubr.f32.mxu0 (!%p139_p2), %v747_v7  ;;  %371 = vmatprep.mubr.f32.mxu1 (!%p139_p2), %v747_v7  ;;  %p164_p3 = scmp.lt.s32.totalorder (!%p139_p2), %s694_s20, 7  ;;  %vm300_vm1 = vcmask (!%p139_p2), 64512  }
   0x7   : > { %v716_v8 = vpack.c.bf16 (!%p139_p2), %v182_v4, %v180_v2  ;;  %v718_v9 = vpack.c.bf16 (!%p139_p2), %v187_v6, %v185_v5  ;;  %v184_v10 = vld [vmem:[%s882_s1 + $0x20] sm:$0xff] (!%p139_p2)  ;;  %v186_v11 = vld [vmem:[%s882_s1 + $0x30] sm:$0xff] (!%p139_p2)  ;;  %v189_v12 = vld [vmem:[%s882_s1 + $0x48] sm:$0xff] (!%p139_p2) }
   0x8   : > { %715 = vmatprep.subr.bf16.mxu0 (!%p139_p2), %v714_v3  ;;  %v191_v13 = vld [vmem:[%s882_s1 + $0x58] sm:$0xff] (!%p139_p2)  ;;  %v720_v14 = vpack.c.bf16 (!%p139_p2), %v186_v11, %v184_v10  ;;  %v188_v16 = vld [vmem:[%s882_s1 + $0x40] sm:$0xff] (!%p139_p2)  ;;  %v190_v17 = vld [vmem:[%s882_s1 + $0x50] sm:$0xff] (!%p139_p2) }
   0x9   : > { %717 = vmatpush1.bf16.msra.mxu0 (!%p139_p2), %v716_v8  ;;  %v722_v15 = vpack.c.bf16 (!%p139_p2), %v191_v13, %v189_v12  ;;  %v193_v18 = vld [vmem:[%s882_s1 + $0x68] sm:$0xff] (!%p139_p2)  ;;  %v195_v19 = vld [vmem:[%s882_s1 + $0x78] sm:$0xff] (!%p139_p2)  ;;  %v724_v20 = vpack.c.bf16 (!%p139_p2), %v190_v17, %v188_v16  ;;  %v192_v22 = vld [vmem:[%s882_s1 + $0x60] sm:$0xff] (!%p139_p2) }
   0xa   : > { %719 = vmatprep.subr.bf16.mxu0 (!%p139_p2), %v718_v9  ;;  %v726_v21 = vpack.c.bf16 (!%p139_p2), %v195_v19, %v193_v18  ;;  %v194_v23 = vld [vmem:[%s882_s1 + $0x70] sm:$0xff] (!%p139_p2)  ;;  %v298_v31 = vld [vmem:[%s883_s2] sm:$0xff] (!%p139_p2)  ;;  %v299_v34 = vld [vmem:[%s883_s2 + $0x8] sm:$0xff] (!%p139_p2) }
   0xb   : > { %v728_v24 = vpack.c.bf16 (!%p139_p2), %v194_v23, %v192_v22 }
   0xd   : > { %s886_s20 = smov (!%p164_p3, %s694_s20), 7  ;;  %721 = vmatpush1.bf16.msra.mxu0 %v720_v14 }
   0xe   : > { %723 = vmatprep.subr.bf16.mxu0 %v722_v15  ;;  %s695_s22 = sshll.u32 %s886_s20, 3  ;;  %s713_s30 = sshll.u32 %s886_s20, 5 }
   0xf   : > { %s167_s25 = scalar_lea.vmem %s881_s0, %s695_s22  ;;  %s860_s6 = scalar_lea.vmem %s884_s3, %s713_s30 }
  0x10   : > { %v176_v25 = vld [vmem:[%s167_s25] sm:$0xff]  ;;  %v177_v26 = vld [vmem:[%s167_s25 + $0x8] sm:$0xff]  ;;  %v178_v27 = vld [vmem:[%s167_s25 + $0x10] sm:$0xff] }
  0x11   : > { %725 = vmatpush1.bf16.msra.mxu0 %v724_v20  ;;  %v179_v28 = vld [vmem:[%s167_s25 + $0x18] sm:$0xff] }
  0x12   : > { %727 = vmatprep.subr.bf16.mxu0 %v726_v21 }
  0x15   : > { %729 = vmatpush1.bf16.msra.mxu0 %v728_v24 }
  0x18   : > { %699 = vmatmul.mubr.msk.f32.vlgmr.msra.gmra.mrb[0].mxu0 %vm196_vm0, %v176_v25 }
  0x19   : > { %279 = vmatprep.mubr.f32.mxu0 %v747_v7 }
  0x1c   : > { %700 = vmatmul.mubr.msk.f32.gmra.mrb[2].mxu0 %vm196_vm0, %v177_v26 }
  0x1d   : > { %285 = vmatprep.mubr.f32.mxu0 %v747_v7 }
  0x20   : > { %701 = vmatmul.mubr.msk.f32.gmra.mrb[4].mxu0 %vm196_vm0, %v178_v27 }
  0x21   : > { %291 = vmatprep.mubr.f32.mxu0 %v747_v7 }
  0x24   : > { %702 = vmatmul.mubr.msk.f32.gmra.mrb[6].mxu0 %vm196_vm0, %v179_v28 }
  0xeb   : > { %v275_v29 = vpop.f32.mrb[0].mxu0 }
  0xec   : > { %v277_v30 = vpop.f32.mrb[1].mxu0 }
  0xed   : > { %307 = vmatprep.subr.mxu1 %v277_v30 }
  0xee   : > { %308 = vmatpush1.msra.mxu1 %v275_v29 }
  0xef   : > { %v281_v32 = vpop.f32.mrb[2].mxu0  ;;  %703 = vmatmul.mubr.msk.f32.vlgmr.msra.gmra.mrb[0].mxu1 %vm300_vm1, %v298_v31 }
  0xf0   : > { %v283_v33 = vpop.f32.mrb[3].mxu0  ;;  %377 = vmatprep.mubr.f32.mxu1 %v747_v7 }
  0xf1   : > { %384 = vmatprep.subr.mxu1 %v283_v33 }
  0xf2   : > { %385 = vmatpush1.msra.mxu1 %v281_v32 }
  0xf3   : > { %704 = vmatmul.mubr.msk.f32.gmra.mrb[2].mxu1 %vm300_vm1, %v299_v34  ;;  %v287_v35 = vpop.f32.mrb[4].mxu0 }
  0xf4   : > { %v289_v36 = vpop.f32.mrb[5].mxu0  ;;  %448 = vmatprep.mubr.f32.mxu1 %v747_v7 }
  0xf5   : > { %461 = vmatprep.subr.mxu1 %v289_v36 }
  0xf7   : > { %705 = vmatmul.mubr.msk.f32.vlgmr.msra.gmra.mrb[4].mxu1 %vm300_vm1, %v298_v31  ;;  %v293_v37 = vpop.f32.mrb[6].mxu0 }
  0xf8   : > { %462 = vmatpush1.msra.mxu1 %v287_v35  ;;  %454 = vmatprep.mubr.f32.mxu1 %v747_v7  ;;  %v295_v38 = vpop.f32.mrb[7].mxu0 }
  0xf9   : > { %538 = vmatprep.subr.mxu1 %v295_v38 }
  0xfb   : > { %706 = vmatmul.mubr.msk.f32.gmra.mrb[6].mxu1 %vm300_vm1, %v299_v34 }
  0xfc   : > { %525 = vmatprep.mubr.f32.mxu1 %v747_v7 }
  0xff   : > { %707 = vmatmul.mubr.msk.f32.vlgmr.msra.gmra.mrb[8].mxu1 %vm300_vm1, %v298_v31 }
 0x100   : > { %539 = vmatpush1.msra.mxu1 %v293_v37  ;;  %531 = vmatprep.mubr.f32.mxu1 %v747_v7 }
 0x103   : > { %708 = vmatmul.mubr.msk.f32.gmra.mrb[10].mxu1 %vm300_vm1, %v299_v34 }
 0x104   : > { %602 = vmatprep.mubr.f32.mxu1 %v747_v7 }
 0x107   : > { %709 = vmatmul.mubr.msk.f32.vlgmr.msra.gmra.mrb[12].mxu1 %vm300_vm1, %v298_v31 }
 0x108   : > { %608 = vmatprep.mubr.f32.mxu1 %v747_v7 }
 0x10b   : > { %710 = vmatmul.mubr.msk.f32.gmra.mrb[14].mxu1 %vm300_vm1, %v299_v34 }
 0x1c2   : > { %v373_v39 = vpop.f32.mrb[0].mxu1 }
 0x1c3   : > { %615 = vst [vmem:[%s860_s6] sm:$0xff] %v373_v39  ;;  %v375_v40 = vpop.f32.mrb[1].mxu1 }
 0x1c4   : > { %616 = vst [vmem:[%s860_s6 + $0x8] sm:$0xff] %v375_v40 }
 0x1c6   : > { %v379_v41 = vpop.f32.mrb[2].mxu1 }
 0x1c7   : > { %617 = vst [vmem:[%s860_s6 + $0x10] sm:$0xff] %v379_v41  ;;  %v381_v42 = vpop.f32.mrb[3].mxu1 }
 0x1c8   : > { %618 = vst [vmem:[%s860_s6 + $0x18] sm:$0xff] %v381_v42 }
 0x1ca   : > { %v450_v43 = vpop.f32.mrb[4].mxu1 }
 0x1cb   : > { %619 = vst [vmem:[%s860_s6 + $0x20] sm:$0xff] %v450_v43  ;;  %v452_v44 = vpop.f32.mrb[5].mxu1 }
 0x1cc   : > { %620 = vst [vmem:[%s860_s6 + $0x28] sm:$0xff] %v452_v44 }
 0x1ce   : > { %v456_v45 = vpop.f32.mrb[6].mxu1 }
 0x1cf   : > { %621 = vst [vmem:[%s860_s6 + $0x30] sm:$0xff] %v456_v45  ;;  %v458_v46 = vpop.f32.mrb[7].mxu1 }
 0x1d0   : > { %622 = vst [vmem:[%s860_s6 + $0x38] sm:$0xff] %v458_v46 }
 0x1d2   : > { %v527_v47 = vpop.f32.mrb[8].mxu1 }
 0x1d3   : > { %623 = vst [vmem:[%s860_s6 + $0x40] sm:$0xff] %v527_v47  ;;  %v529_v48 = vpop.f32.mrb[9].mxu1 }
 0x1d4   : > { %624 = vst [vmem:[%s860_s6 + $0x48] sm:$0xff] %v529_v48 }
 0x1d6   : > { %v533_v49 = vpop.f32.mrb[10].mxu1 }
 0x1d7   : > { %625 = vst [vmem:[%s860_s6 + $0x50] sm:$0xff] %v533_v49  ;;  %v535_v50 = vpop.f32.mrb[11].mxu1 }
 0x1d8   : > { %626 = vst [vmem:[%s860_s6 + $0x58] sm:$0xff] %v535_v50 }
 0x1da   : > { %v604_v51 = vpop.f32.mrb[12].mxu1 }
 0x1db   : > { %627 = vst [vmem:[%s860_s6 + $0x60] sm:$0xff] %v604_v51  ;;  %v606_v52 = vpop.f32.mrb[13].mxu1 }
 0x1dc   : > { %628 = vst [vmem:[%s860_s6 + $0x68] sm:$0xff] %v606_v52 }
 0x1de   : > { %v610_v53 = vpop.f32.mrb[14].mxu1 }
 0x1df   : > { %629 = vst [vmem:[%s860_s6 + $0x70] sm:$0xff] %v610_v53  ;;  %v612_v54 = vpop.f32.mrb[15].mxu1 }
 0x1e0   : > { %630 = vst [vmem:[%s860_s6 + $0x78] sm:$0xff] %v612_v54 }
 0x1e1 PF: > { %s13_s12 = sadd.s32 1, %s745_s12  }
 0x1e2   : > { %p10_p4 = scmp.ge.s32.totalorder %s13_s12, 4  }
 0x1e4   :  { %12 = sbr.rel (!%p10_p4) target bundleno = 1 (0x1), region = 62 }

</bundles_post_ra>
